<compile_context>
chip_gen: v5e
topology: v5e:2x2
jax: 0.10.0
libtpu: 0.0.40
codegen_flags: <defaults>
</compile_context>

<pallas_src>
import jax
import jax.numpy as jnp
from jax import lax
from jax.experimental import pallas as pl
from jax.experimental.pallas import tpu as pltpu


def _round_up(x, m):
    return ((x + m - 1) // m) * m


def _make_ncf_kernel(bf16_relu):
    """Fused NCF MLP kernel.

    bf16_relu: run the ReLU as packed bf16 (v6e/v7x VALUs).  Cast-then-max is
    bit-identical to max-then-cast (monotone cast, cast(0)=0), so this is a
    perf-only knob; it stays f32 on v5e whose VALUs have no bf16 path.
    """
    relu_dtype = jnp.bfloat16 if bf16_relu else jnp.float32
    # Contract the shared last (feature) dim of the (out, in) weight and the
    # batch-major (TB, in) activation -> feature-major (out, TB) result with the
    # batch on the lane axis (lane-dense stores, no XLA-side transpose needed).
    dn = (((1,), (1,)), ((), ()))

    def kernel(u_ref, i_ref, w1u_ref, w1i_ref, b1_ref,
               w2_ref, b2_ref, w3_ref, b3_ref, o_ref):
        u = u_ref[...]                     # (TB, E) bf16, batch-major
        it = i_ref[...]                    # (TB, E) bf16

        # Layer 1: Linear(2E, 64) via split weights (no lane concat) + ReLU.
        h1 = (lax.dot_general(w1u_ref[...], u, dn,
                              preferred_element_type=jnp.float32)
              + lax.dot_general(w1i_ref[...], it, dn,
                                preferred_element_type=jnp.float32)
              + b1_ref[...])                                   # (64, TB) f32
        # Dropout -> identity (eval semantics).
        h1 = jnp.maximum(h1.astype(relu_dtype), 0).astype(jnp.bfloat16)

        # Layer 2: Linear(64, 32) + ReLU.
        h2 = (jnp.dot(w2_ref[...], h1, preferred_element_type=jnp.float32)
              + b2_ref[...])                                   # (32, TB) f32
        h2 = jnp.maximum(h2.astype(relu_dtype), 0).astype(jnp.bfloat16)

        # Layer 3: Linear(32, 1) -> lane-dense (1, TB) output block.
        o_ref[...] = (jnp.dot(w3_ref[...], h2, preferred_element_type=jnp.float32)
                      + b3_ref[...])

    return kernel


def ncf_forward(user, item, params):
    """user, item: int32 (B,) index vectors.  Returns float32 (B,)."""
    user_emb, item_emb = params["user_emb"], params["item_emb"]
    w1u, w1i, b1 = params["w1u"], params["w1i"], params["b1"]
    w2, b2 = params["w2"], params["b2"]
    w3, b3 = params["w3"], params["b3"]

    E = user_emb.shape[1]
    B = user.shape[0]

    # --- Generation detection (trace-time Python, perf knobs only) ----------
    kind = ""
    try:
        kind = jax.devices()[0].device_kind.lower()
    except Exception:  # pragma: no cover - defensive; defaults are safe
        pass
    is_v7 = "v7" in kind
    is_v5e = ("v5e" in kind) or ("v5 lite" in kind) or ("v5lite" in kind)

    # --- Batch tile selection ------------------------------------------------
    # Lane axis carries the batch, so TB must be a multiple of 128.  Use big
    # tiles to amortize the ~0.35 us per-step overhead; v7x (64 MiB VMEM, 2 TCs)
    # caps at 8192 and prefers >= 2 grid steps, v5e/v6e (128 MiB VMEM) at 16384.
    cap = 8192 if is_v7 else 16384
    b128 = _round_up(B, 128)
    min_steps = 2 if (is_v7 and b128 >= 256) else 1
    steps = max(min_steps, -(-b128 // cap))          # ceil(b128 / cap)
    TB = _round_up(-(-b128 // steps), 128)           # minimal padding
    B_pad = TB * steps

    user_p = jnp.pad(user, (0, B_pad - B))           # pad with index 0 (valid row)
    item_p = jnp.pad(item, (0, B_pad - B))

    # Embedding gathers stay in XLA, kept batch-major (B_pad, E): no physical
    # transpose/relayout of the activations in HBM before the kernel.
    # TODO(synk): fuse the gather in-kernel for large E (>= ~512 B rows).
    u_bm = jnp.take(user_emb, user_p, axis=0)        # (B_pad, E) bf16
    i_bm = jnp.take(item_emb, item_p, axis=0)        # (B_pad, E) bf16

    # Advisory cost estimate so XLA schedules the surrounding gather well.
    flops = 2 * B_pad * (2 * E * 64 + 64 * 32 + 32 * 1)
    bytes_accessed = (u_bm.size * 2 + i_bm.size * 2      # bf16 activations in
                      + B_pad * 4                        # f32 output
                      + sum(int(params[k].size) * params[k].dtype.itemsize
                            for k in ("w1u", "w1i", "b1", "w2", "b2", "w3", "b3")))
    cost = pl.CostEstimate(flops=int(flops), transcendentals=0,
                           bytes_accessed=int(bytes_accessed))

    # Weights/biases: constant index maps -> fetched once, VMEM-resident.
    resident = lambda a: pl.BlockSpec(a.shape, lambda b: (0, 0))

    out = pl.pallas_call(
        _make_ncf_kernel(bf16_relu=not is_v5e),
        out_shape=jax.ShapeDtypeStruct((1, B_pad), jnp.float32),
        grid=(steps,),
        in_specs=[
            pl.BlockSpec((TB, E), lambda b: (b, 0)),   # user vectors (batch-tiled)
            pl.BlockSpec((TB, E), lambda b: (b, 0)),   # item vectors (batch-tiled)
            resident(w1u), resident(w1i), resident(b1),
            resident(w2), resident(b2),
            resident(w3), resident(b3),
        ],
        out_specs=pl.BlockSpec((1, TB), lambda b: (0, b)),
        compiler_params=pltpu.CompilerParams(
            dimension_semantics=("parallel",)),
        cost_estimate=cost,
    )(u_bm, i_bm, w1u, w1i, b1, w2, b2, w3, b3)

    return out[0, :B]   # .squeeze()


def init_params(key, num_users, num_items, emb_size):
    ks = jax.random.split(key, 8)
    d_in = emb_size * 2

    def lin(kw, kb, fan_in, fan_out):
        bound = 1.0 / jnp.sqrt(jnp.float32(fan_in))
        w = jax.random.uniform(kw, (fan_out, fan_in), jnp.float32, -bound, bound)
        b = jax.random.uniform(kb, (fan_out, 1), jnp.float32, -bound, bound)
        return w, b

    w1, b1 = lin(ks[2], ks[3], d_in, 64)
    w2, b2 = lin(ks[4], ks[5], 64, 32)
    w3, b3 = lin(ks[6], ks[7], 32, 1)

    return {
        # nn.Embedding default init ~ N(0,1); stored bf16 to halve gather/DMA traffic.
        "user_emb": jax.random.normal(ks[0], (num_users, emb_size)).astype(jnp.bfloat16),
        "item_emb": jax.random.normal(ks[1], (num_items, emb_size)).astype(jnp.bfloat16),
        # Linear weights in PyTorch (out, in) layout; W1 split into its user/item
        # input halves so the kernel never concatenates along the lane axis.
        "w1u": w1[:, :emb_size].astype(jnp.bfloat16),
        "w1i": w1[:, emb_size:].astype(jnp.bfloat16),
        "b1": b1,                                   # (64, 1) f32
        "w2": w2.astype(jnp.bfloat16), "b2": b2,    # (32, 64) bf16 / (32, 1) f32
        "w3": w3.astype(jnp.bfloat16), "b3": b3,    # (1, 32)  bf16 / (1, 1)  f32
    }


def ncf_reference(user, item, params):
    """Pure-JAX reference mirroring the kernel's numerics (bf16 in, f32 acc)."""
    u = jnp.take(params["user_emb"], user, axis=0)      # (B, E) bf16
    i = jnp.take(params["item_emb"], item, axis=0)      # (B, E) bf16
    h1 = (jnp.dot(u, params["w1u"].T, preferred_element_type=jnp.float32)
          + jnp.dot(i, params["w1i"].T, preferred_element_type=jnp.float32)
          + params["b1"].T)
    h1 = jnp.maximum(h1, 0.0).astype(jnp.bfloat16)
    h2 = (jnp.dot(h1, params["w2"].T, preferred_element_type=jnp.float32)
          + params["b2"].T)
    h2 = jnp.maximum(h2, 0.0).astype(jnp.bfloat16)
    y = (jnp.dot(h2, params["w3"].T, preferred_element_type=jnp.float32)
         + params["b3"].T)
    return y.reshape(-1)


if __name__ == "__main__":
    num_users, num_items, emb_size, batch = 10, 12, 16, 8

    key = jax.random.PRNGKey(0)
    k_params, k_user, k_item = jax.random.split(key, 3)
    params = init_params(k_params, num_users, num_items, emb_size)

    user = jax.random.randint(k_user, (batch,), 0, num_users, dtype=jnp.int32)
    item = jax.random.randint(k_item, (batch,), 0, num_items, dtype=jnp.int32)

    fwd = jax.jit(ncf_forward)
    out = jax.block_until_ready(fwd(user, item, params))
    ref = jax.block_until_ready(ncf_reference(user, item, params))

    assert out.shape == (batch,), out.shape
    assert jnp.allclose(out, ref, atol=1e-2, rtol=1e-2), (out, ref)
    print("KERNEL_OK")
</pallas_src>

<mosaic_0001>
module attributes {stable_mosaic.version = 11 : i64} {
  func.func @kernel(%arg0: i32, %arg1: memref<128x16xbf16, #tpu.memory_space<vmem>>, %arg2: memref<128x16xbf16, #tpu.memory_space<vmem>>, %arg3: memref<64x16xbf16, #tpu.memory_space<vmem>>, %arg4: memref<64x16xbf16, #tpu.memory_space<vmem>>, %arg5: memref<64x1xf32, #tpu.memory_space<vmem>>, %arg6: memref<32x64xbf16, #tpu.memory_space<vmem>>, %arg7: memref<32x1xf32, #tpu.memory_space<vmem>>, %arg8: memref<1x32xbf16, #tpu.memory_space<vmem>>, %arg9: memref<1x1xf32, #tpu.memory_space<vmem>>, %arg10: memref<1x128xf32, #tpu.memory_space<vmem>>) attributes {dimension_semantics = [#tpu.dimension_semantics<parallel>], iteration_bounds = array<i64: 1>, scalar_prefetch = 0 : i64, scratch_operands = 0 : i64, tpu.core_type = #tpu.core_type<tc>, window_params = [{transform_indices = @transform_0, window_bounds = array<i64: 128, 16>}, {transform_indices = @transform_1, window_bounds = array<i64: 128, 16>}, {pipeline_mode = #tpu.pipeline_mode<synchronous>, transform_indices = @transform_2, window_bounds = array<i64: 64, 16>}, {pipeline_mode = #tpu.pipeline_mode<synchronous>, transform_indices = @transform_3, window_bounds = array<i64: 64, 16>}, {pipeline_mode = #tpu.pipeline_mode<synchronous>, transform_indices = @transform_4, window_bounds = array<i64: 64, 1>}, {pipeline_mode = #tpu.pipeline_mode<synchronous>, transform_indices = @transform_5, window_bounds = array<i64: 32, 64>}, {pipeline_mode = #tpu.pipeline_mode<synchronous>, transform_indices = @transform_6, window_bounds = array<i64: 32, 1>}, {pipeline_mode = #tpu.pipeline_mode<synchronous>, transform_indices = @transform_7, window_bounds = array<i64: 1, 32>}, {pipeline_mode = #tpu.pipeline_mode<synchronous>, transform_indices = @transform_8, window_bounds = array<i64: 1, 1>}, {transform_indices = @transform_9, window_bounds = array<i64: 1, 128>}]} {
    %c0 = arith.constant 0 : index
    %c0_0 = arith.constant 0 : index
    %0 = vector.load %arg1[%c0, %c0_0] : memref<128x16xbf16, #tpu.memory_space<vmem>>, vector<128x16xbf16>
    %c0_1 = arith.constant 0 : index
    %c0_2 = arith.constant 0 : index
    %1 = vector.load %arg2[%c0_1, %c0_2] : memref<128x16xbf16, #tpu.memory_space<vmem>>, vector<128x16xbf16>
    %c0_3 = arith.constant 0 : index
    %c0_4 = arith.constant 0 : index
    %2 = vector.load %arg3[%c0_3, %c0_4] : memref<64x16xbf16, #tpu.memory_space<vmem>>, vector<64x16xbf16>
    %cst = arith.constant dense<0.000000e+00> : vector<64x128xf32>
    %3 = tpu.matmul %2, %0, %cst {dimension_numbers = #tpu.dot_dimension_numbers<[1], [1], [0], [0], [0, 0, 1, 0], [], []>} : vector<64x16xbf16>, vector<128x16xbf16>, vector<64x128xf32> -> vector<64x128xf32>
    %c0_5 = arith.constant 0 : index
    %c0_6 = arith.constant 0 : index
    %4 = vector.load %arg4[%c0_5, %c0_6] : memref<64x16xbf16, #tpu.memory_space<vmem>>, vector<64x16xbf16>
    %cst_7 = arith.constant dense<0.000000e+00> : vector<64x128xf32>
    %5 = tpu.matmul %4, %1, %cst_7 {dimension_numbers = #tpu.dot_dimension_numbers<[1], [1], [0], [0], [0, 0, 1, 0], [], []>} : vector<64x16xbf16>, vector<128x16xbf16>, vector<64x128xf32> -> vector<64x128xf32>
    %6 = arith.addf %3, %5 : vector<64x128xf32>
    %c0_8 = arith.constant 0 : index
    %c0_9 = arith.constant 0 : index
    %7 = vector.load %arg5[%c0_8, %c0_9] : memref<64x1xf32, #tpu.memory_space<vmem>>, vector<64x1xf32>
    %8 = vector.broadcast %7 : vector<64x1xf32> to vector<64x128xf32>
    %9 = arith.addf %6, %8 : vector<64x128xf32>
    %10 = arith.truncf %9 : vector<64x128xf32> to vector<64x128xbf16>
    %cst_10 = arith.constant 0.000000e+00 : bf16
    %11 = vector.broadcast %cst_10 : bf16 to vector<64x128xbf16>
    %12 = arith.maximumf %10, %11 : vector<64x128xbf16>
    %c0_11 = arith.constant 0 : index
    %c0_12 = arith.constant 0 : index
    %13 = vector.load %arg6[%c0_11, %c0_12] : memref<32x64xbf16, #tpu.memory_space<vmem>>, vector<32x64xbf16>
    %cst_13 = arith.constant dense<0.000000e+00> : vector<32x128xf32>
    %14 = tpu.matmul %13, %12, %cst_13 {dimension_numbers = #tpu.dot_dimension_numbers<[1], [0], [0], [1], [0, 0, 1, 1], [], []>} : vector<32x64xbf16>, vector<64x128xbf16>, vector<32x128xf32> -> vector<32x128xf32>
    %c0_14 = arith.constant 0 : index
    %c0_15 = arith.constant 0 : index
    %15 = vector.load %arg7[%c0_14, %c0_15] : memref<32x1xf32, #tpu.memory_space<vmem>>, vector<32x1xf32>
    %16 = vector.broadcast %15 : vector<32x1xf32> to vector<32x128xf32>
    %17 = arith.addf %14, %16 : vector<32x128xf32>
    %18 = arith.truncf %17 : vector<32x128xf32> to vector<32x128xbf16>
    %cst_16 = arith.constant 0.000000e+00 : bf16
    %19 = vector.broadcast %cst_16 : bf16 to vector<32x128xbf16>
    %20 = arith.maximumf %18, %19 : vector<32x128xbf16>
    %c0_17 = arith.constant 0 : index
    %c0_18 = arith.constant 0 : index
    %21 = vector.load %arg8[%c0_17, %c0_18] : memref<1x32xbf16, #tpu.memory_space<vmem>>, vector<1x32xbf16>
    %cst_19 = arith.constant dense<0.000000e+00> : vector<1x128xf32>
    %22 = tpu.matmul %21, %20, %cst_19 {dimension_numbers = #tpu.dot_dimension_numbers<[1], [0], [0], [1], [0, 0, 1, 1], [], []>} : vector<1x32xbf16>, vector<32x128xbf16>, vector<1x128xf32> -> vector<1x128xf32>
    %c0_20 = arith.constant 0 : index
    %c0_21 = arith.constant 0 : index
    %23 = vector.load %arg9[%c0_20, %c0_21] : memref<1x1xf32, #tpu.memory_space<vmem>>, vector<1x1xf32>
    %24 = vector.broadcast %23 : vector<1x1xf32> to vector<1x128xf32>
    %25 = arith.addf %22, %24 : vector<1x128xf32>
    %c0_22 = arith.constant 0 : index
    %c0_23 = arith.constant 0 : index
    %26 = vector.load %arg10[%c0_22, %c0_23] : memref<1x128xf32, #tpu.memory_space<vmem>>, vector<1x128xf32>
    tpu.vector_store %arg10[%c0_22, %c0_23], %25 {strides = array<i32>} : memref<1x128xf32, #tpu.memory_space<vmem>>, vector<1x128xf32>,
    return
  }
  func.func @transform_0(%arg0: i32) -> (i32, i32) {
    %c0_i32 = arith.constant 0 : i32
    %c0_i32_0 = arith.constant 0 : i32
    return %arg0, %c0_i32 : i32, i32
  }
  func.func @transform_1(%arg0: i32) -> (i32, i32) {
    %c0_i32 = arith.constant 0 : i32
    %c0_i32_0 = arith.constant 0 : i32
    return %arg0, %c0_i32 : i32, i32
  }
  func.func @transform_2(%arg0: i32) -> (i32, i32) {
    %c0_i32 = arith.constant 0 : i32
    %c0_i32_0 = arith.constant 0 : i32
    %c0_i32_1 = arith.constant 0 : i32
    return %c0_i32, %c0_i32_0 : i32, i32
  }
  func.func @transform_3(%arg0: i32) -> (i32, i32) {
    %c0_i32 = arith.constant 0 : i32
    %c0_i32_0 = arith.constant 0 : i32
    %c0_i32_1 = arith.constant 0 : i32
    return %c0_i32, %c0_i32_0 : i32, i32
  }
  func.func @transform_4(%arg0: i32) -> (i32, i32) {
    %c0_i32 = arith.constant 0 : i32
    %c0_i32_0 = arith.constant 0 : i32
    %c0_i32_1 = arith.constant 0 : i32
    return %c0_i32, %c0_i32_0 : i32, i32
  }
  func.func @transform_5(%arg0: i32) -> (i32, i32) {
    %c0_i32 = arith.constant 0 : i32
    %c0_i32_0 = arith.constant 0 : i32
    %c0_i32_1 = arith.constant 0 : i32
    return %c0_i32, %c0_i32_0 : i32, i32
  }
  func.func @transform_6(%arg0: i32) -> (i32, i32) {
    %c0_i32 = arith.constant 0 : i32
    %c0_i32_0 = arith.constant 0 : i32
    %c0_i32_1 = arith.constant 0 : i32
    return %c0_i32, %c0_i32_0 : i32, i32
  }
  func.func @transform_7(%arg0: i32) -> (i32, i32) {
    %c0_i32 = arith.constant 0 : i32
    %c0_i32_0 = arith.constant 0 : i32
    %c0_i32_1 = arith.constant 0 : i32
    return %c0_i32, %c0_i32_0 : i32, i32
  }
  func.func @transform_8(%arg0: i32) -> (i32, i32) {
    %c0_i32 = arith.constant 0 : i32
    %c0_i32_0 = arith.constant 0 : i32
    %c0_i32_1 = arith.constant 0 : i32
    return %c0_i32, %c0_i32_0 : i32, i32
  }
  func.func @transform_9(%arg0: i32) -> (i32, i32) {
    %c0_i32 = arith.constant 0 : i32
    %c0_i32_0 = arith.constant 0 : i32
    return %c0_i32, %arg0 : i32, i32
  }
}

</mosaic_0001>

<bundles_post_ra>
// kernel: ncf_forward.1
= control target key start
LH: loop header
LB: loop body
LE: loop exit
PB: predicated region body
PF: predicated region fallthrough
CT: control target
= control target key end

     0   :  { %vm143_vm0 = vcmask 130048   ;;  %v687_v19 = vmov 0   ;;  %vm456_vm1 = vcmask 523264   ;;  %vm504_vm2 = vcmask 261120   ;;  %s885_s1 = inlined_call_operand.vmem [shape: bf16[128,16], index: 1, kind: input, shape index: {}]   ;;  %s886_s0 = inlined_call_operand.vmem [shape: bf16[128,16], index: 0, kind: input, shape index: {}]   ;;  %s887_s4 = inlined_call_operand.vmem [shape: f32[64,1], index: 4, kind: input, shape index: {}]   ;;  %s888_s3 = inlined_call_operand.vmem [shape: bf16[64,16], index: 3, kind: input, shape index: {}]   ;;  %s889_s2 = inlined_call_operand.vmem [shape: bf16[64,16], index: 2, kind: input, shape index: {}]   ;;  %s890_s6 = inlined_call_operand.vmem [shape: f32[32,1], index: 6, kind: input, shape index: {}]   ;;  %s891_s8 = inlined_call_operand.<no memory space> [shape: f32[1,1], index: 8, kind: input, shape index: {}]   ;;  %s892_s5 = inlined_call_operand.vmem [shape: bf16[32,64], index: 5, kind: input, shape index: {}]   ;;  %s893_s7 = inlined_call_operand.vmem [shape: bf16[1,32], index: 7, kind: input, shape index: {}]   ;;  %s894_s9 = inlined_call_operand.vmem [shape: f32[1,128], index: 9, kind: output, shape index: {}]  }
   0x1   :  { %v656_v0 = vld [vmem:[%s885_s1 + $0x38] sm:$0xff]  ;;  %v655_v4 = vld [vmem:[%s885_s1 + $0x30] sm:$0xff]  ;;  %v654_v8 = vld [vmem:[%s885_s1 + $0x28] sm:$0xff]  ;;  %684 = vset.pattern.permute.xlu0 %v687_v19  ;;  %685 = vset.pattern.permute.xlu1 %v687_v19  ;;  %v14_v44 = vstv %s891_s8 }
   0x2   :  { %v648_v1 = vld [vmem:[%s886_s0 + $0x38] sm:$0xff]  ;;  %v178_v2 = vsel %vm143_vm0, %v656_v0, 0  ;;  %v647_v5 = vld [vmem:[%s886_s0 + $0x30] sm:$0xff]  ;;  %v175_v6 = vsel %vm143_vm0, %v655_v4, 0  ;;  %v646_v9 = vld [vmem:[%s886_s0 + $0x28] sm:$0xff]  ;;  %v172_v10 = vsel %vm143_vm0, %v654_v8, 0  ;;  %686 = vset.pattern.permute.xlu2 %v687_v19 }
   0x3   :  { %v303_v3 = vsel %vm143_vm0, %v648_v1, 0  ;;  %180 = vmatpush.bf16.xpose.msra.mxu0 %v178_v2  ;;  %667 = vmatpush.bf16.xpose.msra.mxu3 %v178_v2  ;;  %v300_v7 = vsel %vm143_vm0, %v647_v5, 0  ;;  %v297_v11 = vsel %vm143_vm0, %v646_v9, 0  ;;  %v653_v12 = vld [vmem:[%s885_s1 + $0x20] sm:$0xff]  ;;  %v652_v16 = vld [vmem:[%s885_s1 + $0x18] sm:$0xff]  ;;  %v340_v17 = vld [vmem:[%s887_s4 + $0x30] sm:$0xff] }
   0x4   :  { %305 = vmatpush.bf16.xpose.msra.mxu1 %v303_v3  ;;  %675 = vmatpush.bf16.xpose.msra.mxu2 %v303_v3  ;;  %v645_v13 = vld [vmem:[%s886_s0 + $0x20] sm:$0xff]  ;;  %v169_v14 = vsel %vm143_vm0, %v653_v12, 0  ;;  %v644_v18 = vld [vmem:[%s886_s0 + $0x18] sm:$0xff]  ;;  %v166_v20 = vsel %vm143_vm0, %v652_v16, 0  ;;  %v651_v24 = vld [vmem:[%s885_s1 + $0x10] sm:$0xff] }
   0x5   :  { %v294_v15 = vsel %vm143_vm0, %v645_v13, 0  ;;  %374 = vperm.xlu0 %684, %v340_v17   ;;  %v291_v21 = vsel %vm143_vm0, %v644_v18, 0  ;;  %v341_v22 = vld [vmem:[%s887_s4 + $0x38] sm:$0xff]  ;;  %v338_v23 = vld [vmem:[%s887_s4 + $0x20] sm:$0xff]  ;;  %v643_v25 = vld [vmem:[%s886_s0 + $0x10] sm:$0xff]  ;;  %v163_v26 = vsel %vm143_vm0, %v651_v24, 0 }
   0x6   :  { %364 = vperm.xlu1 %685, %v338_v23   ;;  %v288_v27 = vsel %vm143_vm0, %v643_v25, 0  ;;  %v339_v28 = vld [vmem:[%s887_s4 + $0x28] sm:$0xff]  ;;  %v334_v29 = vld [vmem:[%s887_s4] sm:$0xff]  ;;  %v663_v40 = vld [vmem:[%s888_s3 + $0x10] sm:$0xff]  ;;  %15 = vst [vmem:[#allocation2] sm:$0x1] %v14_v44 }
   0x7   :  { %v650_v30 = vld [vmem:[%s885_s1 + $0x8] sm:$0xff]  ;;  %v649_v35 = vld [vmem:[%s885_s1] sm:$0xff]  ;;  %v660_v42 = vld [vmem:[%s889_s2 + $0x18] sm:$0xff] }
   0x8   :  { %v642_v31 = vld [vmem:[%s886_s0 + $0x8] sm:$0xff]  ;;  %v160_v32 = vsel %vm143_vm0, %v650_v30, 0  ;;  %v641_v36 = vld [vmem:[%s886_s0] sm:$0xff]  ;;  %v157_v37 = vsel %vm143_vm0, %v649_v35, 0  ;;  %v425_v43 = vld [vmem:[%s890_s6 + $0x18] sm:$0xff] }
   0x9   :  { %v285_v33 = vsel %vm143_vm0, %v642_v31, 0  ;;  %v335_v34 = vld [vmem:[%s887_s4 + $0x8] sm:$0xff]  ;;  %v282_v38 = vsel %vm143_vm0, %v641_v36, 0  ;;  %v661_v39 = vld [vmem:[%s888_s3] sm:$0xff]  ;;  %v336_v46 = vld [vmem:[%s887_s4 + $0x10] sm:$0xff] }
   0xa   :  { %v657_v41 = vld [vmem:[%s889_s2] sm:$0xff]  ;;  %354 = vperm.xlu2 %686, %v336_v46   ;;  %v337_v47 = vld [vmem:[%s887_s4 + $0x18] sm:$0xff]  ;;  %v662_v49 = vld [vmem:[%s888_s3 + $0x8] sm:$0xff] }
   0xb   :  { %181 = vmatpush.bf16.xpose.msra.mxu0 %v175_v6  ;;  %668 = vmatpush.bf16.xpose.msra.mxu3 %v175_v6  ;;  %v422_v45 = vld [vmem:[%s890_s6] sm:$0xff]  ;;  %v664_v50 = vld [vmem:[%s888_s3 + $0x18] sm:$0xff]  ;;  %v658_v51 = vld [vmem:[%s889_s2 + $0x8] sm:$0xff] }
   0xc   :  { %306 = vmatpush.bf16.xpose.msra.mxu1 %v300_v7  ;;  %676 = vmatpush.bf16.xpose.msra.mxu2 %v300_v7  ;;  %v424_v52 = vld [vmem:[%s890_s6 + $0x10] sm:$0xff]  ;;  %v423_v53 = vld [vmem:[%s890_s6 + $0x8] sm:$0xff] }
   0xd   :  { %379 = vperm.xlu0 %684, %v341_v22   ;;  %v497_v48 = vld [vmem:[#allocation2] sm:$0x1]  ;;  %v659_v54 = vld [vmem:[%s889_s2 + $0x10] sm:$0xff]  ;;  %v666_v44 = vld [vmem:[%s892_s5 + $0x8] sm:$0xff] }
   0xe   :  { %369 = vperm.xlu1 %685, %v339_v28  }
  0x12   :  { %359 = vperm.xlu2 %686, %v337_v47  }
  0x13   :  { %182 = vmatpush.bf16.xpose.msra.mxu0 %v172_v10  ;;  %669 = vmatpush.bf16.xpose.msra.mxu3 %v172_v10 }
  0x14   :  { %307 = vmatpush.bf16.xpose.msra.mxu1 %v297_v11  ;;  %677 = vmatpush.bf16.xpose.msra.mxu2 %v297_v11 }
  0x15   :  { %344 = vperm.xlu0 %684, %v334_v29  }
  0x16   :  { %349 = vperm.xlu1 %685, %v335_v34  }
  0x1a   :  { %438 = vperm.xlu2 %686, %v424_v52  }
  0x1b   :  { %183 = vmatpush.bf16.xpose.msra.mxu0 %v169_v14  ;;  %670 = vmatpush.bf16.xpose.msra.mxu3 %v169_v14 }
  0x1c   :  { %308 = vmatpush.bf16.xpose.msra.mxu1 %v294_v15  ;;  %678 = vmatpush.bf16.xpose.msra.mxu2 %v294_v15 }
  0x1d   :  { %443 = vperm.xlu0 %684, %v425_v43   ;;  %v665_v43 = vld [vmem:[%s892_s5] sm:$0xff] }
  0x1e   :  { %428 = vperm.xlu1 %685, %v422_v45  }
  0x22   :  { %433 = vperm.xlu2 %686, %v423_v53  }
  0x23   :  { %184 = vmatpush.bf16.xpose.msra.mxu0 %v166_v20  ;;  %671 = vmatpush.bf16.xpose.msra.mxu3 %v166_v20 }
  0x24   :  { %309 = vmatpush.bf16.xpose.msra.mxu1 %v291_v21  ;;  %679 = vmatpush.bf16.xpose.msra.mxu2 %v291_v21 }
  0x25   :  { %500 = vperm.xlu0 %684, %v497_v48  }
  0x2b   :  { %185 = vmatpush.bf16.xpose.msra.mxu0 %v163_v26  ;;  %672 = vmatpush.bf16.xpose.msra.mxu3 %v163_v26 }
  0x2c   :  { %310 = vmatpush.bf16.xpose.msra.mxu1 %v288_v27  ;;  %680 = vmatpush.bf16.xpose.msra.mxu2 %v288_v27 }
  0x33   :  { %186 = vmatpush.bf16.xpose.msra.mxu0 %v160_v32  ;;  %673 = vmatpush.bf16.xpose.msra.mxu3 %v160_v32 }
  0x34   :  { %311 = vmatpush.bf16.xpose.msra.mxu1 %v285_v33  ;;  %681 = vmatpush.bf16.xpose.msra.mxu2 %v285_v33 }
  0x3b   :  { %187 = vmatpush.bf16.xpose.msra.mxu0 %v157_v37  ;;  %674 = vmatpush.bf16.xpose.msra.mxu3 %v157_v37 }
  0x3c   :  { %312 = vmatpush.bf16.xpose.msra.mxu1 %v282_v38  ;;  %682 = vmatpush.bf16.xpose.msra.mxu2 %v282_v38 }
  0x42   :  { %574 = vmatmul.msk.bf16.vlgmr.msra.gmra.mxu0 %vm143_vm0, %v661_v39  ;;  %576 = vmatmul.msk.bf16.vlgmr.msra.gmra.mxu3 %vm143_vm0, %v663_v40 }
  0x43   :  { %626 = vmatmul.msk.bf16.vlgmr.msra.gmra.mxu1 %vm143_vm0, %v657_v41  ;;  %629 = vmatmul.msk.bf16.vlgmr.msra.gmra.mxu2 %vm143_vm0, %v660_v42 }
  0x52   :  { %575 = vmatmul.msk.bf16.gmra.mxu0 %vm143_vm0, %v662_v49  ;;  %577 = vmatmul.msk.bf16.gmra.mxu3 %vm143_vm0, %v664_v50 }
  0x53   :  { %627 = vmatmul.msk.bf16.gmra.mxu1 %vm143_vm0, %v658_v51 }
  0x63   :  { %628 = vmatmul.msk.bf16.gmra.mxu1 %vm143_vm0, %v659_v54 }
  0x64   :  { %v355_v10 = vpop.permute.xlu2 %354 }
  0x6c   :  { %v360_v24 = vpop.permute.xlu2 %359 }
  0x74   :  { %v439_v47 = vpop.permute.xlu2 %438 }
  0x77   :  { %v375_v63 = vpop.permute.xlu0 %374 }
  0x78   :  { %v365_v1 = vpop.permute.xlu1 %364 }
  0x7c   :  { %v434_v51 = vpop.permute.xlu2 %433 }
  0x7f   :  { %v380_v9 = vpop.permute.xlu0 %379 }
  0x80   :  { %v370_v13 = vpop.permute.xlu1 %369 }
  0x87   :  { %v345_v33 = vpop.permute.xlu0 %344 }
  0x88   :  { %v350_v28 = vpop.permute.xlu1 %349 }
  0x8f   :  { %v444_v49 = vpop.permute.xlu0 %443 }
  0xbf   :  { %v189_v57 = vpop.f32.mrf.mxu0 }
  0xc0   :  { %v314_v55 = vpop.f32.mrf.mxu1 }
  0xc1   :  { %v315_v29 = vadd.f32 %v314_v55, %v189_v57  ;;  %v429_v55 = vpop.permute.xlu1 %428 }
  0xc3   :  { %v382_v37 = vadd.f32 %v345_v33, %v315_v29 }
  0xc5   :  { %v199_v56 = vpop.f32.mrf.mxu3  ;;  %v406_v41 = vmax.f32 %v382_v37, 0.0 }
  0xc6   :  { %v329_v62 = vpop.f32.mrf.mxu2 }
  0xc7   :  { %v191_v60 = vpop.f32.mrf.mxu0 }
  0xc8   :  { %v316_v58 = vpop.f32.mrf.mxu1 }
  0xc9   :  { %v317_v25 = vadd.f32 %v316_v58, %v191_v60 }
  0xcb   :  { %v383_v34 = vadd.f32 %v350_v28, %v317_v25 }
  0xcd   :  { %v201_v59 = vpop.f32.mrf.mxu3  ;;  %v407_v39 = vmax.f32 %v383_v34, 0.0 }
  0xce   :  { %v331_v5 = vpop.f32.mrf.mxu2 }
  0xcf   :  { %v194_v3 = vpop.f32.mrf.mxu0  ;;  %v414_v42 = vpack.c.bf16 %v407_v39, %v406_v41 }
  0xd0   :  { %v319_v61 = vpop.f32.mrf.mxu1 }
  0xd1   :  { %v320_v21 = vadd.f32 %v319_v61, %v194_v3 }
  0xd3   :  { %v384_v30 = vadd.f32 %v355_v10, %v320_v21 }
  0xd5   :  { %v204_v0 = vpop.f32.mrf.mxu3  ;;  %v408_v38 = vmax.f32 %v384_v30, 0.0 }
  0xd6   :  { %v330_v4 = vadd.f32 %v329_v62, %v204_v0  ;;  %v501_v0 = vpop.permute.xlu0 %500 }
  0xd7   :  { %v196_v16 = vpop.f32.mrf.mxu0 }
  0xd8   :  { %v321_v2 = vpop.f32.mrf.mxu1  ;;  %v388_v7 = vadd.f32 %v375_v63, %v330_v4  ;;  %v496_v63 = vld [vmem:[%s893_s7] sm:$0x1] }
  0xd9   :  { %v322_v19 = vadd.f32 %v321_v2, %v196_v16 }
  0xda   :  { %v412_v14 = vmax.f32 %v388_v7, 0.0 }
  0xdb   :  { %v385_v26 = vadd.f32 %v360_v24, %v322_v19 }
  0xdd   :  { %v206_v6 = vpop.f32.mrf.mxu3  ;;  %v409_v35 = vmax.f32 %v385_v26, 0.0 }
  0xde   :  { %v332_v8 = vadd.f32 %v331_v5, %v206_v6 }
  0xdf   :  { %v415_v40 = vpack.c.bf16 %v409_v35, %v408_v38 }
  0xe0   :  { %v389_v11 = vadd.f32 %v380_v9, %v332_v8  ;;  %v324_v12 = vpop.f32.mrf.mxu1 }
  0xe1   :  { %v325_v18 = vadd.f32 %v324_v12, %v199_v56 }
  0xe2   :  { %v413_v15 = vmax.f32 %v389_v11, 0.0 }
  0xe3   :  { %v386_v22 = vadd.f32 %v365_v1, %v325_v18  ;;  %v503_v1 = vperm.slane %v501_v0, 0 }
  0xe4   :  { %v417_v17 = vpack.c.bf16 %v413_v15, %v412_v14 }
  0xe5   :  { %v410_v31 = vmax.f32 %v386_v22, 0.0 }
  0xe6   :  { %467 = vmatpush.bf16.msrb.mxu2 %v417_v17 }
  0xe8   :  { %v326_v20 = vpop.f32.mrf.mxu1 }
  0xe9   :  { %v327_v23 = vadd.f32 %v326_v20, %v201_v59 }
  0xeb   :  { %v387_v27 = vadd.f32 %v370_v13, %v327_v23 }
  0xed   :  { %v411_v32 = vmax.f32 %v387_v27, 0.0 }
  0xef   :  { %v416_v36 = vpack.c.bf16 %v411_v32, %v410_v31 }
  0xf1   :  { %468 = vmatpush.bf16.msrb.mxu2 %v416_v36 }
  0xf5   :  { %469 = vmatpush.bf16.msrb.mxu2 %v415_v40 }
  0xf9   :  { %470 = vmatpush.bf16.msrb.mxu2 %v414_v42 }
  0xfc   :  { %638 = vmatmul.msk.bf16.vlgmr.msrb.gmra.mxu2 %vm456_vm1, %v665_v43 }
 0x10c   :  { %639 = vmatmul.msk.bf16.gmra.mxu2 %vm456_vm1, %v666_v44 }
 0x17f   :  { %v472_v45 = vpop.f32.mrf.mxu2 }
 0x180   :  { %v473_v56 = vadd.f32 %v472_v45, %v429_v55 }
 0x182   :  { %v490_v61 = vmax.f32 %v473_v56, 0.0 }
 0x187   :  { %v474_v46 = vpop.f32.mrf.mxu2 }
 0x188   :  { %v475_v53 = vadd.f32 %v474_v46, %v434_v51 }
 0x18a   :  { %v491_v59 = vmax.f32 %v475_v53, 0.0 }
 0x18c   :  { %v494_v62 = vpack.c.bf16 %v491_v59, %v490_v61 }
 0x18f   :  { %v477_v48 = vpop.f32.mrf.mxu2 }
 0x190   :  { %v478_v50 = vadd.f32 %v477_v48, %v439_v47 }
 0x192   :  { %v492_v57 = vmax.f32 %v478_v50, 0.0 }
 0x197   :  { %v479_v52 = vpop.f32.mrf.mxu2 }
 0x198   :  { %v480_v54 = vadd.f32 %v479_v52, %v444_v49 }
 0x19a   :  { %v493_v58 = vmax.f32 %v480_v54, 0.0 }
 0x19c   :  { %v495_v60 = vpack.c.bf16 %v493_v58, %v492_v57 }
 0x19e   :  { %514 = vmatpush.bf16.msrb.mxu3 %v495_v60 }
 0x1a2   :  { %515 = vmatpush.bf16.msrb.mxu3 %v494_v62 }
 0x1a5   :  { %640 = vmatmul.msk.bf16.vlgmr.msrb.gmra.mxu3 %vm504_vm2, %v496_v63 }
 0x228   :  { %v517_v2 = vpop.f32.mrf.mxu3 }
 0x229   :  { %v518_v3 = vadd.f32 %v517_v2, %v503_v1 }
 0x22b   :  { %521 = vst [vmem:[%s894_s9] sm:$0x1] %v518_v3 }
 0x230   :  { %v519_v4 = vpop.f32.mrf.mxu3 }

</bundles_post_ra>
